<compile_context>
chip_gen: v7x
topology: tpu7x:2x2x1
jax: 0.10.0
libtpu: 0.0.40
codegen_flags: <defaults>
</compile_context>

<pallas_src>
import jax
import jax.numpy as jnp
from jax.experimental import pallas as pl
from jax.experimental.pallas import tpu as pltpu

LANE = 128
SUB = 16  # batch-tile multiple; satisfies sublane packing for both f32 (8) and bf16 (16)


def _round_up(x, m):
    return (x + m - 1) // m * m


def _pad2(a, rows, cols, dtype):
    a = jnp.asarray(a, dtype)
    pr, pc = rows - a.shape[0], cols - a.shape[1]
    if pr == 0 and pc == 0:
        return a
    return jnp.pad(a, ((0, pr), (0, pc)))


def _leaky_relu(v, slope=0.2):
    return jnp.where(v > 0, v, slope * v)


# ----------------------------------------------------------------------------- kernel ---
def decoder_kernel(x_ref,
                   w1_ref, b1_ref,
                   w2_ref, b2_ref,
                   w3_ref, b3_ref,
                   w4_ref, b4_ref,
                   o_ref):
    """One batch tile: (TB, in_dim) -> (TB, out_p). Weights stay VMEM-resident."""
    cd = w1_ref.dtype  # compute dtype for MXU operands (bf16 by default)

    x = x_ref[...].astype(cd)  # in-kernel cast: no wrapper-side pass over x

    # Layer 1: Linear + LeakyReLU(0.2)   (bf16 operands, f32 accumulate, f32 epilogue)
    h = jnp.dot(x, w1_ref[...], preferred_element_type=jnp.float32) + b1_ref[...]
    h = _leaky_relu(h)

    # Layer 2
    h = jnp.dot(h.astype(cd), w2_ref[...], preferred_element_type=jnp.float32) + b2_ref[...]
    h = _leaky_relu(h)

    # Layer 3
    h = jnp.dot(h.astype(cd), w3_ref[...], preferred_element_type=jnp.float32) + b3_ref[...]
    h = _leaky_relu(h)

    # Layer 4 (no activation)
    y = jnp.dot(h.astype(cd), w4_ref[...], preferred_element_type=jnp.float32) + b4_ref[...]

    o_ref[...] = y.astype(o_ref.dtype)


# ------------------------------------------------------------------- param preparation ---
def prepare_decoder_params(params, *, compute_dtype=jnp.bfloat16):
    """Pad hidden/output feature dims to 128 lanes and cast weights to the compute dtype.

    Do this ONCE and reuse the result across calls: it hoists the f32->bf16 read+write
    pass over every weight matrix out of the per-call path.
    """
    in_dim, hidden = params["w1"].shape
    out_dim = params["w4"].shape[1]
    hid_p = _round_up(hidden, LANE)
    out_p = _round_up(out_dim, LANE)
    prep = {
        "w1": _pad2(params["w1"], in_dim, hid_p, compute_dtype),
        "b1": _pad2(params["b1"], 1, hid_p, jnp.float32),
        "w2": _pad2(params["w2"], hid_p, hid_p, compute_dtype),
        "b2": _pad2(params["b2"], 1, hid_p, jnp.float32),
        "w3": _pad2(params["w3"], hid_p, hid_p, compute_dtype),
        "b3": _pad2(params["b3"], 1, hid_p, jnp.float32),
        "w4": _pad2(params["w4"], hid_p, out_p, compute_dtype),
        "b4": _pad2(params["b4"], 1, out_p, jnp.float32),
    }
    dims = {"in_dim": int(in_dim), "hidden": int(hidden), "out_dim": int(out_dim),
            "hid_p": int(hid_p), "out_p": int(out_p)}
    return prep, dims


def _vmem_budget():
    """Generation-aware (budget_bytes, default_batch_tile)."""
    try:
        cap = int(pltpu.get_tpu_info().vmem_capacity_bytes)
    except Exception:
        cap = 64 * 1024 * 1024  # conservative fallback (v7x-sized)
    if cap <= 80 * 1024 * 1024:
        # v7x: 64 MiB per TensorCore -> leave headroom for Mosaic internal scratch.
        return min(cap - 8 * 1024 * 1024, 56 * 1024 * 1024), 512
    # v5e / v6e: 128 MiB -> use it (bigger batch tiles, fewer per-step overheads).
    return min(cap - 24 * 1024 * 1024, 100 * 1024 * 1024), 1024


# ----------------------------------------------------------------------------- wrapper ---
def decoder_forward(x, prep, dims, *, block_b=None, out_dtype=jnp.float32):
    """x: (B, input_dim). prep/dims: from prepare_decoder_params. Returns (B, output_dim)."""
    B, in_dim = x.shape
    assert in_dim == dims["in_dim"], "x feature dim does not match prepared params"
    hid_p, out_p = dims["hid_p"], dims["out_p"]

    budget, default_tb = _vmem_budget()
    if block_b is None:
        block_b = default_tb

    x_bytes = x.dtype.itemsize
    out_bytes = jnp.dtype(out_dtype).itemsize
    w_bytes = sum(prep[k].size * prep[k].dtype.itemsize for k in ("w1", "w2", "w3", "w4"))
    b_bytes = sum(prep[k].size * prep[k].dtype.itemsize for k in ("b1", "b2", "b3", "b4"))

    def vmem_need(tb, weight_bufs):
        return (2 * tb * in_dim * x_bytes          # double-buffered x tiles
                + 2 * tb * out_p * out_bytes       # double-buffered y tiles
                + weight_bufs * (w_bytes + b_bytes)
                + 3 * tb * hid_p * 4)              # live f32 activation headroom

    # Batch tile: multiple of SUB; shrink while resident weights + tiles exceed budget.
    TB = _round_up(min(block_b, _round_up(B, SUB)), SUB)
    while TB > SUB and vmem_need(TB, 2) > budget:
        TB = _round_up(TB // 2, SUB)

    # Guarantee >= 2 grid steps when the batch allows it, so the "parallel" axis can
    # shard across both TensorCores on v7x (costs nothing on single-TC v5e/v6e).
    if B > SUB and _round_up(B, TB) // TB < 2:
        TB = min(TB, _round_up((B + 1) // 2, SUB))

    B_p = _round_up(B, TB)
    grid = (B_p // TB,)

    # Pad batch rows only (zero rows -> bias-only outputs, sliced off below). No feature pad.
    xp = x if B_p == B else jnp.pad(x, ((0, B_p - B), (0, 0)))

    flops = 2 * B_p * (in_dim * hid_p + 2 * hid_p * hid_p + hid_p * out_p)
    bytes_accessed = B_p * in_dim * x_bytes + w_bytes + b_bytes + B_p * out_p * out_bytes
    vmem_limit = int(min(budget, max(int(vmem_need(TB, 2) * 1.3), 16 * 1024 * 1024)))

    batch_map = lambda i: (i, 0)   # x/y tiles move with the grid
    resident = lambda i: (0, 0)    # weights/biases stay put in VMEM

    def run(weight_pipeline_mode):
        def wspec(shape):
            if weight_pipeline_mode is None:
                return pl.BlockSpec(shape, resident)
            return pl.BlockSpec(shape, resident, pipeline_mode=weight_pipeline_mode)

        in_specs = [
            pl.BlockSpec((TB, in_dim), batch_map),   # native feature width (no 128 pad)
            wspec((in_dim, hid_p)), wspec((1, hid_p)),
            wspec((hid_p, hid_p)), wspec((1, hid_p)),
            wspec((hid_p, hid_p)), wspec((1, hid_p)),
            wspec((hid_p, out_p)), wspec((1, out_p)),
        ]
        return pl.pallas_call(
            decoder_kernel,
            out_shape=jax.ShapeDtypeStruct((B_p, out_p), out_dtype),
            grid=grid,
            in_specs=in_specs,
            out_specs=pl.BlockSpec((TB, out_p), batch_map),
            compiler_params=pltpu.CompilerParams(
                dimension_semantics=("parallel",),   # dual-TC sharding on v7x
                vmem_limit_bytes=vmem_limit,
            ),
            cost_estimate=pl.CostEstimate(
                flops=int(flops), transcendentals=0, bytes_accessed=int(bytes_accessed)),
        )(xp, prep["w1"], prep["b1"], prep["w2"], prep["b2"],
          prep["w3"], prep["b3"], prep["w4"], prep["b4"])

    try:
        # Resident (constant index_map) weights/biases: single-buffer them.
        y_pad = run(pl.Buffered(1))
    except Exception:
        # Fallback for jax versions without BlockSpec pipeline_mode support.
        y_pad = run(None)

    return y_pad[:B, :dims["out_dim"]]


# ------------------------------------------------------------------------------- setup ---
def init_decoder_params(key, input_dim, hidden_dim, output_dim):
    """Deterministic synthetic initialization (uniform, PyTorch-Linear-like scale)."""
    dims = [(input_dim, hidden_dim),
            (hidden_dim, hidden_dim),
            (hidden_dim, hidden_dim),
            (hidden_dim, output_dim)]
    params = {}
    for i, (d_in, d_out) in enumerate(dims, start=1):
        key, kw, kb = jax.random.split(key, 3)
        bound = 1.0 / jnp.sqrt(d_in)
        # Stored as (in, out): equivalent to PyTorch weight (out, in) transposed.
        params[f"w{i}"] = jax.random.uniform(
            kw, (d_in, d_out), jnp.float32, minval=-bound, maxval=bound)
        params[f"b{i}"] = jax.random.uniform(
            kb, (1, d_out), jnp.float32, minval=-bound, maxval=bound)
    return params


def decoder_reference(x, params, compute_dtype=jnp.bfloat16):
    """Pure-JAX reference with the same bf16-operand / f32-accumulate precision."""
    def lin(h, w, b):
        return jnp.dot(h.astype(compute_dtype), w.astype(compute_dtype),
                       preferred_element_type=jnp.float32) + b.astype(jnp.float32)

    h = lin(x, params["w1"], params["b1"])
    h = jnp.where(h > 0, h, 0.2 * h)
    h = lin(h, params["w2"], params["b2"])
    h = jnp.where(h > 0, h, 0.2 * h)
    h = lin(h, params["w3"], params["b3"])
    h = jnp.where(h > 0, h, 0.2 * h)
    return lin(h, params["w4"], params["b4"])


if __name__ == "__main__":
    key = jax.random.PRNGKey(0)
    kx, kp = jax.random.split(key)

    batch = 64
    input_dim = 8       # e.g. latent dim
    hidden_dim = 32
    output_dim = 16

    x = jax.random.normal(kx, (batch, input_dim), dtype=jnp.float32)
    params = init_decoder_params(kp, input_dim, hidden_dim, output_dim)

    # Hoisted, one-time param preparation (pad + bf16 cast), reused across calls.
    prep, dims = prepare_decoder_params(params, compute_dtype=jnp.bfloat16)

    y = decoder_forward(x, prep, dims)
    y = jax.block_until_ready(y)

    y_ref = decoder_reference(x, params)
    assert y.shape == (batch, output_dim)
    assert bool(jnp.all(jnp.isfinite(y))), "non-finite output"
    assert jnp.allclose(y, y_ref, atol=2e-3, rtol=2e-3), "mismatch vs reference"

    print("KERNEL_OK")
</pallas_src>

<mosaic_0001>
module attributes {stable_mosaic.version = 11 : i64} {
  func.func @decoder_kernel(%arg0: i32, %arg1: memref<32x8xf32, #tpu.memory_space<vmem>>, %arg2: memref<8x128xbf16, #tpu.memory_space<vmem>>, %arg3: memref<1x128xf32, #tpu.memory_space<vmem>>, %arg4: memref<128x128xbf16, #tpu.memory_space<vmem>>, %arg5: memref<1x128xf32, #tpu.memory_space<vmem>>, %arg6: memref<128x128xbf16, #tpu.memory_space<vmem>>, %arg7: memref<1x128xf32, #tpu.memory_space<vmem>>, %arg8: memref<128x128xbf16, #tpu.memory_space<vmem>>, %arg9: memref<1x128xf32, #tpu.memory_space<vmem>>, %arg10: memref<32x128xf32, #tpu.memory_space<vmem>>) attributes {dimension_semantics = [#tpu.dimension_semantics<parallel>], iteration_bounds = array<i64: 2>, scalar_prefetch = 0 : i64, scratch_operands = 0 : i64, tpu.core_type = #tpu.core_type<tc>, window_params = [{transform_indices = @transform_0, window_bounds = array<i64: 32, 8>}, {pipeline_mode = #tpu.pipeline_mode<synchronous>, transform_indices = @transform_1, window_bounds = array<i64: 8, 128>}, {pipeline_mode = #tpu.pipeline_mode<synchronous>, transform_indices = @transform_2, window_bounds = array<i64: 1, 128>}, {pipeline_mode = #tpu.pipeline_mode<synchronous>, transform_indices = @transform_3, window_bounds = array<i64: 128, 128>}, {pipeline_mode = #tpu.pipeline_mode<synchronous>, transform_indices = @transform_4, window_bounds = array<i64: 1, 128>}, {pipeline_mode = #tpu.pipeline_mode<synchronous>, transform_indices = @transform_5, window_bounds = array<i64: 128, 128>}, {pipeline_mode = #tpu.pipeline_mode<synchronous>, transform_indices = @transform_6, window_bounds = array<i64: 1, 128>}, {pipeline_mode = #tpu.pipeline_mode<synchronous>, transform_indices = @transform_7, window_bounds = array<i64: 128, 128>}, {pipeline_mode = #tpu.pipeline_mode<synchronous>, transform_indices = @transform_8, window_bounds = array<i64: 1, 128>}, {transform_indices = @transform_9, window_bounds = array<i64: 32, 128>}]} {
    %c0 = arith.constant 0 : index
    %c0_0 = arith.constant 0 : index
    %0 = vector.load %arg1[%c0, %c0_0] : memref<32x8xf32, #tpu.memory_space<vmem>>, vector<32x8xf32>
    %1 = arith.truncf %0 : vector<32x8xf32> to vector<32x8xbf16>
    %c0_1 = arith.constant 0 : index
    %c0_2 = arith.constant 0 : index
    %2 = vector.load %arg2[%c0_1, %c0_2] : memref<8x128xbf16, #tpu.memory_space<vmem>>, vector<8x128xbf16>
    %cst = arith.constant dense<0.000000e+00> : vector<32x128xf32>
    %3 = tpu.matmul %1, %2, %cst {dimension_numbers = #tpu.dot_dimension_numbers<[1], [0], [0], [1], [0, 0, 1, 1], [], []>} : vector<32x8xbf16>, vector<8x128xbf16>, vector<32x128xf32> -> vector<32x128xf32>
    %c0_3 = arith.constant 0 : index
    %c0_4 = arith.constant 0 : index
    %4 = vector.load %arg3[%c0_3, %c0_4] : memref<1x128xf32, #tpu.memory_space<vmem>>, vector<1x128xf32>
    %5 = vector.broadcast %4 : vector<1x128xf32> to vector<32x128xf32>
    %6 = arith.addf %3, %5 : vector<32x128xf32>
    %cst_5 = arith.constant 0.000000e+00 : f32
    %7 = vector.broadcast %cst_5 : f32 to vector<32x128xf32>
    %8 = arith.cmpf ogt, %6, %7 : vector<32x128xf32>
    %cst_6 = arith.constant 2.000000e-01 : f32
    %9 = vector.broadcast %cst_6 : f32 to vector<32x128xf32>
    %10 = arith.mulf %9, %6 : vector<32x128xf32>
    %11 = arith.select %8, %6, %10 : vector<32x128xi1>, vector<32x128xf32>
    %12 = arith.truncf %11 : vector<32x128xf32> to vector<32x128xbf16>
    %c0_7 = arith.constant 0 : index
    %c0_8 = arith.constant 0 : index
    %13 = vector.load %arg4[%c0_7, %c0_8] : memref<128x128xbf16, #tpu.memory_space<vmem>>, vector<128x128xbf16>
    %cst_9 = arith.constant dense<0.000000e+00> : vector<32x128xf32>
    %14 = tpu.matmul %12, %13, %cst_9 {dimension_numbers = #tpu.dot_dimension_numbers<[1], [0], [0], [1], [0, 0, 1, 1], [], []>} : vector<32x128xbf16>, vector<128x128xbf16>, vector<32x128xf32> -> vector<32x128xf32>
    %c0_10 = arith.constant 0 : index
    %c0_11 = arith.constant 0 : index
    %15 = vector.load %arg5[%c0_10, %c0_11] : memref<1x128xf32, #tpu.memory_space<vmem>>, vector<1x128xf32>
    %16 = vector.broadcast %15 : vector<1x128xf32> to vector<32x128xf32>
    %17 = arith.addf %14, %16 : vector<32x128xf32>
    %cst_12 = arith.constant 0.000000e+00 : f32
    %18 = vector.broadcast %cst_12 : f32 to vector<32x128xf32>
    %19 = arith.cmpf ogt, %17, %18 : vector<32x128xf32>
    %cst_13 = arith.constant 2.000000e-01 : f32
    %20 = vector.broadcast %cst_13 : f32 to vector<32x128xf32>
    %21 = arith.mulf %20, %17 : vector<32x128xf32>
    %22 = arith.select %19, %17, %21 : vector<32x128xi1>, vector<32x128xf32>
    %23 = arith.truncf %22 : vector<32x128xf32> to vector<32x128xbf16>
    %c0_14 = arith.constant 0 : index
    %c0_15 = arith.constant 0 : index
    %24 = vector.load %arg6[%c0_14, %c0_15] : memref<128x128xbf16, #tpu.memory_space<vmem>>, vector<128x128xbf16>
    %cst_16 = arith.constant dense<0.000000e+00> : vector<32x128xf32>
    %25 = tpu.matmul %23, %24, %cst_16 {dimension_numbers = #tpu.dot_dimension_numbers<[1], [0], [0], [1], [0, 0, 1, 1], [], []>} : vector<32x128xbf16>, vector<128x128xbf16>, vector<32x128xf32> -> vector<32x128xf32>
    %c0_17 = arith.constant 0 : index
    %c0_18 = arith.constant 0 : index
    %26 = vector.load %arg7[%c0_17, %c0_18] : memref<1x128xf32, #tpu.memory_space<vmem>>, vector<1x128xf32>
    %27 = vector.broadcast %26 : vector<1x128xf32> to vector<32x128xf32>
    %28 = arith.addf %25, %27 : vector<32x128xf32>
    %cst_19 = arith.constant 0.000000e+00 : f32
    %29 = vector.broadcast %cst_19 : f32 to vector<32x128xf32>
    %30 = arith.cmpf ogt, %28, %29 : vector<32x128xf32>
    %cst_20 = arith.constant 2.000000e-01 : f32
    %31 = vector.broadcast %cst_20 : f32 to vector<32x128xf32>
    %32 = arith.mulf %31, %28 : vector<32x128xf32>
    %33 = arith.select %30, %28, %32 : vector<32x128xi1>, vector<32x128xf32>
    %34 = arith.truncf %33 : vector<32x128xf32> to vector<32x128xbf16>
    %c0_21 = arith.constant 0 : index
    %c0_22 = arith.constant 0 : index
    %35 = vector.load %arg8[%c0_21, %c0_22] : memref<128x128xbf16, #tpu.memory_space<vmem>>, vector<128x128xbf16>
    %cst_23 = arith.constant dense<0.000000e+00> : vector<32x128xf32>
    %36 = tpu.matmul %34, %35, %cst_23 {dimension_numbers = #tpu.dot_dimension_numbers<[1], [0], [0], [1], [0, 0, 1, 1], [], []>} : vector<32x128xbf16>, vector<128x128xbf16>, vector<32x128xf32> -> vector<32x128xf32>
    %c0_24 = arith.constant 0 : index
    %c0_25 = arith.constant 0 : index
    %37 = vector.load %arg9[%c0_24, %c0_25] : memref<1x128xf32, #tpu.memory_space<vmem>>, vector<1x128xf32>
    %38 = vector.broadcast %37 : vector<1x128xf32> to vector<32x128xf32>
    %39 = arith.addf %36, %38 : vector<32x128xf32>
    %c0_26 = arith.constant 0 : index
    %c0_27 = arith.constant 0 : index
    %40 = vector.load %arg10[%c0_26, %c0_27] : memref<32x128xf32, #tpu.memory_space<vmem>>, vector<32x128xf32>
    tpu.vector_store %arg10[%c0_26, %c0_27], %39 {strides = array<i32>} : memref<32x128xf32, #tpu.memory_space<vmem>>, vector<32x128xf32>,
    return
  }
  func.func @transform_0(%arg0: i32) -> (i32, i32) {
    %c0_i32 = arith.constant 0 : i32
    %c0_i32_0 = arith.constant 0 : i32
    return %arg0, %c0_i32 : i32, i32
  }
  func.func @transform_1(%arg0: i32) -> (i32, i32) {
    %c0_i32 = arith.constant 0 : i32
    %c0_i32_0 = arith.constant 0 : i32
    %c0_i32_1 = arith.constant 0 : i32
    return %c0_i32, %c0_i32_0 : i32, i32
  }
  func.func @transform_2(%arg0: i32) -> (i32, i32) {
    %c0_i32 = arith.constant 0 : i32
    %c0_i32_0 = arith.constant 0 : i32
    %c0_i32_1 = arith.constant 0 : i32
    return %c0_i32, %c0_i32_0 : i32, i32
  }
  func.func @transform_3(%arg0: i32) -> (i32, i32) {
    %c0_i32 = arith.constant 0 : i32
    %c0_i32_0 = arith.constant 0 : i32
    %c0_i32_1 = arith.constant 0 : i32
    return %c0_i32, %c0_i32_0 : i32, i32
  }
  func.func @transform_4(%arg0: i32) -> (i32, i32) {
    %c0_i32 = arith.constant 0 : i32
    %c0_i32_0 = arith.constant 0 : i32
    %c0_i32_1 = arith.constant 0 : i32
    return %c0_i32, %c0_i32_0 : i32, i32
  }
  func.func @transform_5(%arg0: i32) -> (i32, i32) {
    %c0_i32 = arith.constant 0 : i32
    %c0_i32_0 = arith.constant 0 : i32
    %c0_i32_1 = arith.constant 0 : i32
    return %c0_i32, %c0_i32_0 : i32, i32
  }
  func.func @transform_6(%arg0: i32) -> (i32, i32) {
    %c0_i32 = arith.constant 0 : i32
    %c0_i32_0 = arith.constant 0 : i32
    %c0_i32_1 = arith.constant 0 : i32
    return %c0_i32, %c0_i32_0 : i32, i32
  }
  func.func @transform_7(%arg0: i32) -> (i32, i32) {
    %c0_i32 = arith.constant 0 : i32
    %c0_i32_0 = arith.constant 0 : i32
    %c0_i32_1 = arith.constant 0 : i32
    return %c0_i32, %c0_i32_0 : i32, i32
  }
  func.func @transform_8(%arg0: i32) -> (i32, i32) {
    %c0_i32 = arith.constant 0 : i32
    %c0_i32_0 = arith.constant 0 : i32
    %c0_i32_1 = arith.constant 0 : i32
    return %c0_i32, %c0_i32_0 : i32, i32
  }
  func.func @transform_9(%arg0: i32) -> (i32, i32) {
    %c0_i32 = arith.constant 0 : i32
    %c0_i32_0 = arith.constant 0 : i32
    return %arg0, %c0_i32 : i32, i32
  }
}

module attributes {stable_mosaic.version = 11 : i64} {
  func.func @decoder_kernel(%arg0: i32, %arg1: memref<32x8xf32, #tpu.memory_space<vmem>>, %arg2: memref<8x128xbf16, #tpu.memory_space<vmem>>, %arg3: memref<1x128xf32, #tpu.memory_space<vmem>>, %arg4: memref<128x128xbf16, #tpu.memory_space<vmem>>, %arg5: memref<1x128xf32, #tpu.memory_space<vmem>>, %arg6: memref<128x128xbf16, #tpu.memory_space<vmem>>, %arg7: memref<1x128xf32, #tpu.memory_space<vmem>>, %arg8: memref<128x128xbf16, #tpu.memory_space<vmem>>, %arg9: memref<1x128xf32, #tpu.memory_space<vmem>>, %arg10: memref<32x128xf32, #tpu.memory_space<vmem>>) attributes {dimension_semantics = [#tpu.dimension_semantics<parallel>], iteration_bounds = array<i64: 2>, scalar_prefetch = 0 : i64, scratch_operands = 0 : i64, tpu.core_type = #tpu.core_type<tc>, window_params = [{transform_indices = @transform_0, window_bounds = array<i64: 32, 8>}, {pipeline_mode = #tpu.pipeline_mode<synchronous>, transform_indices = @transform_1, window_bounds = array<i64: 8, 128>}, {pipeline_mode = #tpu.pipeline_mode<synchronous>, transform_indices = @transform_2, window_bounds = array<i64: 1, 128>}, {pipeline_mode = #tpu.pipeline_mode<synchronous>, transform_indices = @transform_3, window_bounds = array<i64: 128, 128>}, {pipeline_mode = #tpu.pipeline_mode<synchronous>, transform_indices = @transform_4, window_bounds = array<i64: 1, 128>}, {pipeline_mode = #tpu.pipeline_mode<synchronous>, transform_indices = @transform_5, window_bounds = array<i64: 128, 128>}, {pipeline_mode = #tpu.pipeline_mode<synchronous>, transform_indices = @transform_6, window_bounds = array<i64: 1, 128>}, {pipeline_mode = #tpu.pipeline_mode<synchronous>, transform_indices = @transform_7, window_bounds = array<i64: 128, 128>}, {pipeline_mode = #tpu.pipeline_mode<synchronous>, transform_indices = @transform_8, window_bounds = array<i64: 1, 128>}, {transform_indices = @transform_9, window_bounds = array<i64: 32, 128>}]} {
    %c0 = arith.constant 0 : index
    %c0_0 = arith.constant 0 : index
    %0 = vector.load %arg1[%c0, %c0_0] : memref<32x8xf32, #tpu.memory_space<vmem>>, vector<32x8xf32>
    %1 = arith.truncf %0 : vector<32x8xf32> to vector<32x8xbf16>
    %c0_1 = arith.constant 0 : index
    %c0_2 = arith.constant 0 : index
    %2 = vector.load %arg2[%c0_1, %c0_2] : memref<8x128xbf16, #tpu.memory_space<vmem>>, vector<8x128xbf16>
    %cst = arith.constant dense<0.000000e+00> : vector<32x128xf32>
    %3 = tpu.matmul %1, %2, %cst {dimension_numbers = #tpu.dot_dimension_numbers<[1], [0], [0], [1], [0, 0, 1, 1], [], []>} : vector<32x8xbf16>, vector<8x128xbf16>, vector<32x128xf32> -> vector<32x128xf32>
    %c0_3 = arith.constant 0 : index
    %c0_4 = arith.constant 0 : index
    %4 = vector.load %arg3[%c0_3, %c0_4] : memref<1x128xf32, #tpu.memory_space<vmem>>, vector<1x128xf32>
    %5 = vector.broadcast %4 : vector<1x128xf32> to vector<32x128xf32>
    %6 = arith.addf %3, %5 : vector<32x128xf32>
    %cst_5 = arith.constant 0.000000e+00 : f32
    %7 = vector.broadcast %cst_5 : f32 to vector<32x128xf32>
    %8 = arith.cmpf ogt, %6, %7 : vector<32x128xf32>
    %cst_6 = arith.constant 2.000000e-01 : f32
    %9 = vector.broadcast %cst_6 : f32 to vector<32x128xf32>
    %10 = arith.mulf %9, %6 : vector<32x128xf32>
    %11 = arith.select %8, %6, %10 : vector<32x128xi1>, vector<32x128xf32>
    %12 = arith.truncf %11 : vector<32x128xf32> to vector<32x128xbf16>
    %c0_7 = arith.constant 0 : index
    %c0_8 = arith.constant 0 : index
    %13 = vector.load %arg4[%c0_7, %c0_8] : memref<128x128xbf16, #tpu.memory_space<vmem>>, vector<128x128xbf16>
    %cst_9 = arith.constant dense<0.000000e+00> : vector<32x128xf32>
    %14 = tpu.matmul %12, %13, %cst_9 {dimension_numbers = #tpu.dot_dimension_numbers<[1], [0], [0], [1], [0, 0, 1, 1], [], []>} : vector<32x128xbf16>, vector<128x128xbf16>, vector<32x128xf32> -> vector<32x128xf32>
    %c0_10 = arith.constant 0 : index
    %c0_11 = arith.constant 0 : index
    %15 = vector.load %arg5[%c0_10, %c0_11] : memref<1x128xf32, #tpu.memory_space<vmem>>, vector<1x128xf32>
    %16 = vector.broadcast %15 : vector<1x128xf32> to vector<32x128xf32>
    %17 = arith.addf %14, %16 : vector<32x128xf32>
    %cst_12 = arith.constant 0.000000e+00 : f32
    %18 = vector.broadcast %cst_12 : f32 to vector<32x128xf32>
    %19 = arith.cmpf ogt, %17, %18 : vector<32x128xf32>
    %cst_13 = arith.constant 2.000000e-01 : f32
    %20 = vector.broadcast %cst_13 : f32 to vector<32x128xf32>
    %21 = arith.mulf %20, %17 : vector<32x128xf32>
    %22 = arith.select %19, %17, %21 : vector<32x128xi1>, vector<32x128xf32>
    %23 = arith.truncf %22 : vector<32x128xf32> to vector<32x128xbf16>
    %c0_14 = arith.constant 0 : index
    %c0_15 = arith.constant 0 : index
    %24 = vector.load %arg6[%c0_14, %c0_15] : memref<128x128xbf16, #tpu.memory_space<vmem>>, vector<128x128xbf16>
    %cst_16 = arith.constant dense<0.000000e+00> : vector<32x128xf32>
    %25 = tpu.matmul %23, %24, %cst_16 {dimension_numbers = #tpu.dot_dimension_numbers<[1], [0], [0], [1], [0, 0, 1, 1], [], []>} : vector<32x128xbf16>, vector<128x128xbf16>, vector<32x128xf32> -> vector<32x128xf32>
    %c0_17 = arith.constant 0 : index
    %c0_18 = arith.constant 0 : index
    %26 = vector.load %arg7[%c0_17, %c0_18] : memref<1x128xf32, #tpu.memory_space<vmem>>, vector<1x128xf32>
    %27 = vector.broadcast %26 : vector<1x128xf32> to vector<32x128xf32>
    %28 = arith.addf %25, %27 : vector<32x128xf32>
    %cst_19 = arith.constant 0.000000e+00 : f32
    %29 = vector.broadcast %cst_19 : f32 to vector<32x128xf32>
    %30 = arith.cmpf ogt, %28, %29 : vector<32x128xf32>
    %cst_20 = arith.constant 2.000000e-01 : f32
    %31 = vector.broadcast %cst_20 : f32 to vector<32x128xf32>
    %32 = arith.mulf %31, %28 : vector<32x128xf32>
    %33 = arith.select %30, %28, %32 : vector<32x128xi1>, vector<32x128xf32>
    %34 = arith.truncf %33 : vector<32x128xf32> to vector<32x128xbf16>
    %c0_21 = arith.constant 0 : index
    %c0_22 = arith.constant 0 : index
    %35 = vector.load %arg8[%c0_21, %c0_22] : memref<128x128xbf16, #tpu.memory_space<vmem>>, vector<128x128xbf16>
    %cst_23 = arith.constant dense<0.000000e+00> : vector<32x128xf32>
    %36 = tpu.matmul %34, %35, %cst_23 {dimension_numbers = #tpu.dot_dimension_numbers<[1], [0], [0], [1], [0, 0, 1, 1], [], []>} : vector<32x128xbf16>, vector<128x128xbf16>, vector<32x128xf32> -> vector<32x128xf32>
    %c0_24 = arith.constant 0 : index
    %c0_25 = arith.constant 0 : index
    %37 = vector.load %arg9[%c0_24, %c0_25] : memref<1x128xf32, #tpu.memory_space<vmem>>, vector<1x128xf32>
    %38 = vector.broadcast %37 : vector<1x128xf32> to vector<32x128xf32>
    %39 = arith.addf %36, %38 : vector<32x128xf32>
    %c0_26 = arith.constant 0 : index
    %c0_27 = arith.constant 0 : index
    %40 = vector.load %arg10[%c0_26, %c0_27] : memref<32x128xf32, #tpu.memory_space<vmem>>, vector<32x128xf32>
    tpu.vector_store %arg10[%c0_26, %c0_27], %39 {strides = array<i32>} : memref<32x128xf32, #tpu.memory_space<vmem>>, vector<32x128xf32>,
    return
  }
  func.func @transform_0(%arg0: i32) -> (i32, i32) {
    %c0_i32 = arith.constant 0 : i32
    %c0_i32_0 = arith.constant 0 : i32
    return %arg0, %c0_i32 : i32, i32
  }
  func.func @transform_1(%arg0: i32) -> (i32, i32) {
    %c0_i32 = arith.constant 0 : i32
    %c0_i32_0 = arith.constant 0 : i32
    %c0_i32_1 = arith.constant 0 : i32
    return %c0_i32, %c0_i32_0 : i32, i32
  }
  func.func @transform_2(%arg0: i32) -> (i32, i32) {
    %c0_i32 = arith.constant 0 : i32
    %c0_i32_0 = arith.constant 0 : i32
    %c0_i32_1 = arith.constant 0 : i32
    return %c0_i32, %c0_i32_0 : i32, i32
  }
  func.func @transform_3(%arg0: i32) -> (i32, i32) {
    %c0_i32 = arith.constant 0 : i32
    %c0_i32_0 = arith.constant 0 : i32
    %c0_i32_1 = arith.constant 0 : i32
    return %c0_i32, %c0_i32_0 : i32, i32
  }
  func.func @transform_4(%arg0: i32) -> (i32, i32) {
    %c0_i32 = arith.constant 0 : i32
    %c0_i32_0 = arith.constant 0 : i32
    %c0_i32_1 = arith.constant 0 : i32
    return %c0_i32, %c0_i32_0 : i32, i32
  }
  func.func @transform_5(%arg0: i32) -> (i32, i32) {
    %c0_i32 = arith.constant 0 : i32
    %c0_i32_0 = arith.constant 0 : i32
    %c0_i32_1 = arith.constant 0 : i32
    return %c0_i32, %c0_i32_0 : i32, i32
  }
  func.func @transform_6(%arg0: i32) -> (i32, i32) {
    %c0_i32 = arith.constant 0 : i32
    %c0_i32_0 = arith.constant 0 : i32
    %c0_i32_1 = arith.constant 0 : i32
    return %c0_i32, %c0_i32_0 : i32, i32
  }
  func.func @transform_7(%arg0: i32) -> (i32, i32) {
    %c0_i32 = arith.constant 0 : i32
    %c0_i32_0 = arith.constant 0 : i32
    %c0_i32_1 = arith.constant 0 : i32
    return %c0_i32, %c0_i32_0 : i32, i32
  }
  func.func @transform_8(%arg0: i32) -> (i32, i32) {
    %c0_i32 = arith.constant 0 : i32
    %c0_i32_0 = arith.constant 0 : i32
    %c0_i32_1 = arith.constant 0 : i32
    return %c0_i32, %c0_i32_0 : i32, i32
  }
  func.func @transform_9(%arg0: i32) -> (i32, i32) {
    %c0_i32 = arith.constant 0 : i32
    %c0_i32_0 = arith.constant 0 : i32
    return %arg0, %c0_i32 : i32, i32
  }
}

</mosaic_0001>

<bundles_post_ra>
// kernel: tpu_custom_call.1
= control target key start
LH: loop header
LB: loop body
LE: loop exit
PB: predicated region body
PF: predicated region fallthrough
CT: control target
= control target key end

     0   :  { %14 = vsyncpa [#allocation3], 0  ;;  %s1576_s0 = inlined_call_operand.vmem [shape: f32[64,8], index: 0, kind: input, shape index: {}]   ;;  %s1577_s1 = inlined_call_operand.vmem [shape: bf16[8,128], index: 1, kind: input, shape index: {}]   ;;  %s1578_s2 = inlined_call_operand.vmem [shape: f32[1,128], index: 2, kind: input, shape index: {}]   ;;  %s1579_s3 = inlined_call_operand.vmem [shape: bf16[128,128], index: 3, kind: input, shape index: {}]   ;;  %s1580_s4 = inlined_call_operand.vmem [shape: f32[1,128], index: 4, kind: input, shape index: {}]   ;;  %s1581_s5 = inlined_call_operand.hbm [shape: bf16[128,128], index: 5, kind: input, shape index: {}]   ;;  %s1582_s6 = inlined_call_operand.vmem [shape: f32[1,128], index: 6, kind: input, shape index: {}]   ;;  %s1583_s7 = inlined_call_operand.hbm [shape: bf16[128,128], index: 7, kind: input, shape index: {}]   ;;  %s1584_s8 = inlined_call_operand.vmem [shape: f32[1,128], index: 8, kind: input, shape index: {}]   ;;  %s1585_s9 = inlined_call_operand.hbm [shape: f32[64,128], index: 9, kind: output, shape index: {}]  }
   0x1   :  { %15 = vsyncpa [#allocation6], 0 }
   0x2   :  { %16 = vsyncpa [#allocation4], 0 }
   0x3   :  { %18 = vsyncpa [#allocation4 + $0x1], 0  ;;  %s1363_s30 = smov 0   ;;  %s1365_s10 = smov 0  }
   0x4   :  { %s1367_s11 = smov 0   ;;  %s1369_s12 = smov 0  }
   0x5 LB: > { %1592 = sst [smem:[#allocation11_spill]] %s1300_s11  ;;  %s1384_s13 = sadd.s32 4294967295, %s1304_s12   ;;  %s1304_s12 = sphi %s1369_s12, %s1606_s12   ;;  %s1300_s11 = sphi %s1367_s11, %s1608_s11   ;;  %s1296_s10 = sphi %s1365_s10, %s1610_s10   ;;  %s1292_s30 = sphi %s1363_s30, %s1609_s30  }
   0x6   : > { %s943_s14 = sadd.s32 4294967294, %s1304_s12   ;;  %s1388_s15 = sadd.s32 1, %s1304_s12  }
   0x7   : > { %1593 = sst [smem:[#allocation12_spill]] %s1388_s15  ;;  %s225_s16 = sadd.s32 1, %s1300_s11 }
   0x8   : > { %s222_s17 = ssub.s32 %s1304_s12, %s1388_s15  ;;  %p235_p0 = scmp.ne.s32.totalorder %s1300_s11, %s1296_s10 }
   0x9   : > { %p223_p1 = scmp.eq.s32.totalorder %s222_s17, 0  ;;  %p236_p2 = scmp.eq.s32.totalorder %s1384_s13, 1 }
   0xa   : > { %p241_p3 = scmp.ne.s32.totalorder %s1296_s10, %s1292_s30  ;;  %p242_p4 = scmp.eq.s32.totalorder %s943_s14, 1 }
   0xb   : > { %s1399_s18 = scalar_select %p223_p1, %s1300_s11, %s225_s16  }
   0xc   : > { %p1401_p5 = por %p236_p2, %p235_p0  ;;  %p1405_p6 = por %p242_p4, %p241_p3 }
   0xd   : > { %1594 = sst [smem:[#allocation13_spill]] %s1399_s18  ;;  %p944_p7 = scmp.ge.s32.totalorder %s1304_s12, 1 }
   0xe   : > { %s1595_s19 = scalar_select %p1401_p5, 1, 0 }
   0xf   : > { %s1596_s20 = scalar_select %p1405_p6, 1, 0 }
  0x10   : > { %p249_p8 = scmp.lt.s32.totalorder %s1304_s12, 3  ;;  %p1586_p9 = scmp.eq.s32.totalorder %s1384_s13, 0 }
  0x11   : > { %s1306_s22 = smov [#allocation2]   ;;  %s1307_s25 = smov [#allocation5]  }
  0x12   : > { %p1412_p10 = pnand %p944_p7, %p249_p8  ;;  %s273_s23 = sshll.u32 %s1306_s22, 4  ;;  %s274_s23 = int_to_ptr.vmem [resolvable:$true] %s273_s23 }
  0x13   : > { %s289_s26 = sshll.u32 %s1307_s25, 4  ;;  %s1178_s29 = scalar_lea.hbm %s1581_s5, 1024  ;;  %s1424_s26 = int_to_ptr.vmem [resolvable:$true] %s289_s26 }
  0x14   : > { %s1597_s21 = scalar_select %p1412_p10, 1, 0 }
  0x15   : > { %p1100_p11 = pneg %p1412_p10  ;;  %p1179_p13 = scmp.ne.s32.totalorder %s1581_s5, %s1178_s29 }
  0x16   : > { %p1185_p3 = scmp.lt.u32.totalorder %s1178_s29, %s1581_s5 }
  0x17   : > { %p1420_p12 = pnand %p1586_p9, %p1100_p11 }
  0x19   : > { %p1180_p0 = pneg %p1420_p12 }
  0x1b   : > { %p1181_p1 = pnand %p1180_p0, %p1179_p13 }
  0x1d   : > { %p1182_p2 = pneg %p1181_p1 }
  0x1f   : > { %p1187_p4 = pnand %p1185_p3, %p1182_p2 }
  0x21   : > { %1190 = shalt.err (!%p1187_p4)
}
  0x22   : > { %s1191_s25 = scalar_lea.vmem %s274_s23, 1024  ;;  %p1199_p9 = scmp.lt.s32.totalorder %s274_s23, %s274_s23 }
  0x23   : > { %p1192_p7 = scmp.ne.s32.totalorder %s274_s23, %s1191_s25  ;;  %p1200_p6 = scmp.lt.s32.totalorder %s1191_s25, %s1191_s25 }
  0x25   : > { %p1194_p8 = pnand %p1192_p7, %p1180_p0  ;;  %p1201_p5 = por %p1200_p6, %p1199_p9 }
  0x27   : > { %p1195_p11 = pneg %p1194_p8 }
  0x29   : > { %p1202_p10 = pnand %p1201_p5, %p1195_p11 }
  0x2b   : > { %1205 = shalt.err (!%p1202_p10)
}
  0x2c   : > { %s1308_s27 = smov 64   ;;  %s1309_s28 = smov 4  }
  0x2d   : > { %1103 = dma.hbm_to_vmem [thread:$0]  (!%p1420_p12), %s1581_s5, 1024, %s274_s23, [#allocation3], %s1308_s27, %s1308_s27, %s1309_s28  }
  0x2e   : > { %s1206_s22 = scalar_lea.hbm %s1583_s7, 1024 }
  0x2f   : > { %p1207_p13 = scmp.ne.s32.totalorder %s1583_s7, %s1206_s22  ;;  %p1213_p9 = scmp.lt.u32.totalorder %s1206_s22, %s1583_s7 }
  0x31   : > { %p1209_p5 = pnand %p1207_p13, %p1180_p0 }
  0x33   : > { %p1210_p6 = pneg %p1209_p5 }
  0x35   : > { %p1215_p10 = pnand %p1213_p9, %p1210_p6 }
  0x37   : > { %1218 = shalt.err (!%p1215_p10)
}
  0x38   : > { %s1219_s23 = scalar_lea.vmem %s1424_s26, 1024  ;;  %p1227_p4 = scmp.lt.s32.totalorder %s1424_s26, %s1424_s26 }
  0x39   : > { %p1220_p1 = scmp.ne.s32.totalorder %s1424_s26, %s1219_s23  ;;  %p1228_p7 = scmp.lt.s32.totalorder %s1219_s23, %s1219_s23 }
  0x3b   : > { %p1222_p2 = pnand %p1220_p1, %p1180_p0  ;;  %p1229_p8 = por %p1228_p7, %p1227_p4 }
  0x3d   : > { %p1223_p3 = pneg %p1222_p2 }
  0x3f   : > { %p1230_p11 = pnand %p1229_p8, %p1223_p3 }
  0x41   : > { %1233 = shalt.err (!%p1230_p11)
}
  0x42   : > { %1106 = dma.hbm_to_vmem [thread:$0]  (!%p1420_p12), %s1583_s7, 1024, %s1424_s26, [#allocation6], %s1308_s27, %s1308_s27, %s1309_s28  }
  0x43   : > { %p1599_p13 = scmp.ne.s32.totalorder %s1597_s21, 0 }
  0x44   : > { %p1600_p5 = scmp.eq.s32.totalorder (!%p1599_p13), %s1384_s13, 0 }
  0x45   : > { %317 = sbr.rel (%p1599_p13) target bundleno = 992 (0x3e0), region = 56 }
  0x4c   : > { %1279 = dma.done.wait (%p1600_p5), [#allocation3], 1024   ;;  %p1601_p0 = pmov %p1600_p5 }
  0x4e   : > { %1281 = vsyncadd (%p1601_p0), [#allocation3], 4294966272  ;;  %p1602_p6 = pmov %p1601_p0 }
  0x4f   : > { %p1603_p9 = pmov %p1601_p0 }
  0x50   : > { %1283 = dma.done.wait (%p1602_p6), [#allocation6], 1024  }
  0x51   : > { %1285 = vsyncadd (%p1603_p9), [#allocation6], 4294966272  ;;  %s952_s18 = sshll.u32 %s1384_s13, 2  ;;  %vm386_vm0 = vcmask 1043456   ;;  %v371_v0 = vld [vmem:[%s1577_s1] sm:$0xf] }
  0x52   : > { %p358_p10 = scmp.lt.s32.totalorder %s952_s18, 7  ;;  %vm379_vm1 = vcmask 64512   ;;  %1089 = vmatprep.subr.msk.bf16.mxu0 %vm386_vm0, %v371_v0  ;;  %v388_v3 = vsel %vm386_vm0, %v371_v0, 0  ;;  %v1154_v8 = vld [vmem:[%s1579_s3] sm:$0xff]   ;;  %v1155_v9 = vld [vmem:[%s1579_s3 + $0x8] sm:$0xff]   ;;  %v1156_v10 = vld [vmem:[%s1579_s3 + $0x10] sm:$0xff]  }
  0x53   : > { %1024 = vmatpush3.bf16.msra.mxu0 %v388_v3  ;;  %1029 = vmatprep.subr.bf16.mxu1 %v1154_v8  ;;  %v1157_v11 = vld [vmem:[%s1579_s3 + $0x18] sm:$0xff]   ;;  %v1158_v12 = vld [vmem:[%s1579_s3 + $0x20] sm:$0xff]   ;;  %v1159_v13 = vld [vmem:[%s1579_s3 + $0x28] sm:$0xff]   ;;  %s354_s15 = sand.u32 1, %s1296_s10   ;;  %s989_s28 = sshll.u32 %s1384_s13, 9 }
  0x54   : > { %s1612_s18 = smov (!%p358_p10, %s952_s18), 7  ;;  %1030 = vmatpush3.bf16.msra.mxu1 %v1154_v8  ;;  %v1160_v14 = vld [vmem:[%s1579_s3 + $0x30] sm:$0xff]   ;;  %v1161_v15 = vld [vmem:[%s1579_s3 + $0x38] sm:$0xff]   ;;  %v1162_v16 = vld [vmem:[#allocation2] sm:$0xff]   ;;  %s1533_s16 = scalar_lea.hbm %s1585_s9, %s989_s28 }
  0x55   : > { %s953_s24 = sshll.u32 %s1612_s18, 3  ;;  %1031 = vmatprep.subr.bf16.mxu1 %v1155_v9  ;;  %v1163_v17 = vld [vmem:[#allocation2 + $0x8] sm:$0xff]   ;;  %1049 = vmatprep.subr.bf16.mxu0 %v1162_v16  ;;  %v1164_v18 = vld [vmem:[#allocation2 + $0x10] sm:$0xff]   ;;  %v1165_v19 = vld [vmem:[#allocation2 + $0x18] sm:$0xff]   ;;  %s951_s18 = sshll.u32 %s354_s15, 5 }
  0x56   : > { %s361_s27 = scalar_lea.vmem %s1576_s0, %s953_s24  ;;  %v1166_v20 = vld [vmem:[#allocation2 + $0x20] sm:$0xff]   ;;  %v1167_v40 = vld [vmem:[#allocation2 + $0x28] sm:$0xff]   ;;  %v1168_v41 = vld [vmem:[#allocation2 + $0x30] sm:$0xff]   ;;  %s356_s26 = scalar_lea.vmem [#allocation7], %s951_s18 }
  0x57   : > { %v365_v1 = vld [vmem:[%s361_s27] sm:$0xff]  ;;  %v366_v2 = vld [vmem:[%s361_s27 + $0x8] sm:$0xff]  ;;  %v367_v5 = vld [vmem:[%s361_s27 + $0x10] sm:$0xff]  ;;  %s1535_s13 = scalar_lea.sflag [#allocation4], %s354_s15  ;;  %p1604_p1 = scmp.ne.s32.totalorder %s1595_s19, 0 }
  0x58   : > { %v369_v4 = vpack.c.bf16 %v366_v2, %v365_v1  ;;  %v368_v6 = vld [vmem:[%s361_s27 + $0x18] sm:$0xff]  ;;  %1032 = vmatpush3.bf16.msra.mxu1 %v1155_v9  ;;  %v954_v21 = vld [vmem:[%s1578_s2] ss:$0 sm:$0xff]  ;;  %v1171_v44 = vld [vmem:[#allocation5 + $0x8] sm:$0xff]   ;;  %s859_s27 = sshll.u32 %s356_s26, 4  ;;  %s1310_s22 = smov [#allocation7]   ;;  %s1528_s27 = int_to_ptr.vmem [resolvable:$true] %s859_s27 }
  0x59   : > { %v370_v7 = vpack.c.bf16 %v368_v6, %v367_v5  ;;  %1033 = vmatprep.subr.bf16.mxu1 %v1156_v10  ;;  %v1169_v42 = vld [vmem:[#allocation2 + $0x38] sm:$0xff]   ;;  %v1170_v43 = vld [vmem:[#allocation5] sm:$0xff]   ;;  %v1172_v45 = vld [vmem:[#allocation5 + $0x10] sm:$0xff]   ;;  %s1234_s17 = scalar_lea.vmem %s1528_s27, 512  ;;  %s1238_s25 = sshll.u32 %s1310_s22, 4  ;;  %s1239_s25 = int_to_ptr.vmem [resolvable:$false] %s1238_s25 }
  0x5a   : > { %1025 = vmatprep.mubr.msk.bf16.mxu0 %vm379_vm1, %v369_v4  ;;  %v1173_v46 = vld [vmem:[#allocation5 + $0x18] sm:$0xff]   ;;  %v1174_v47 = vld [vmem:[#allocation5 + $0x20] sm:$0xff]   ;;  %v1175_v3 = vld [vmem:[#allocation5 + $0x28] sm:$0xff]   ;;  %p1235_p12 = scmp.ne.s32.totalorder %s1528_s27, %s1234_s17  ;;  %s1240_s23 = scalar_lea.vmem %s1239_s25, 1024 }
  0x5b   : > { %1026 = vmatmul.mubr.msk.bf16.vlgmr.msra.gmra.mrb[0].mxu0 %vm379_vm1, %v370_v7  ;;  %v957_v48 = vld [vmem:[%s1580_s4] ss:$0 sm:$0xff]  ;;  %v1176_v4 = vld [vmem:[#allocation5 + $0x30] sm:$0xff]   ;;  %v1177_v5 = vld [vmem:[#allocation5 + $0x38] sm:$0xff]   ;;  %p1241_p4 = scmp.lt.s32.totalorder %s1528_s27, %s1239_s25  ;;  %p1242_p7 = scmp.lt.s32.totalorder %s1240_s23, %s1234_s17 }
  0x5c   : > { %1034 = vmatpush3.bf16.msra.mxu1 %v1156_v10  ;;  %1050 = vmatpush3.bf16.msra.mxu0 %v1162_v16  ;;  %v966_v6 = vld [vmem:[%s1582_s6] ss:$0 sm:$0xff]  ;;  %p1236_p2 = pnand %p1235_p12, %p1604_p1 }
  0x5d   : > { %1035 = vmatprep.subr.bf16.mxu1 %v1157_v11  ;;  %1051 = vmatprep.subr.bf16.mxu0 %v1163_v17  ;;  %p1243_p8 = por %p1242_p7, %p1241_p4 }
  0x5e   : > { %p1237_p3 = pneg %p1236_p2 }
  0x60   : > { %1036 = vmatpush3.bf16.msra.mxu1 %v1157_v11  ;;  %1052 = vmatpush3.bf16.msra.mxu0 %v1163_v17  ;;  %p1244_p11 = pnand %p1243_p8, %p1237_p3 }
  0x61   : > { %1037 = vmatprep.subr.bf16.mxu1 %v1158_v12  ;;  %1053 = vmatprep.subr.bf16.mxu0 %v1164_v18 }
  0x64   : > { %1038 = vmatpush3.bf16.msra.mxu1 %v1158_v12  ;;  %1054 = vmatpush3.bf16.msra.mxu0 %v1164_v18 }
  0x65   : > { %1039 = vmatprep.subr.bf16.mxu1 %v1159_v13  ;;  %1055 = vmatprep.subr.bf16.mxu0 %v1165_v19 }
  0x68   : > { %1040 = vmatpush3.bf16.msra.mxu1 %v1159_v13  ;;  %1056 = vmatpush3.bf16.msra.mxu0 %v1165_v19 }
  0x69   : > { %1041 = vmatprep.subr.bf16.mxu1 %v1160_v14  ;;  %1057 = vmatprep.subr.bf16.mxu0 %v1166_v20 }
  0x6c   : > { %1042 = vmatpush3.bf16.msra.mxu1 %v1160_v14  ;;  %1058 = vmatpush3.bf16.msra.mxu0 %v1166_v20 }
  0x6d   : > { %1043 = vmatprep.subr.bf16.mxu1 %v1161_v15  ;;  %1059 = vmatprep.subr.bf16.mxu0 %v1167_v40 }
  0x70   : > { %1044 = vmatpush3.bf16.msra.mxu1 %v1161_v15  ;;  %1060 = vmatpush3.bf16.msra.mxu0 %v1167_v40 }
  0x71   : > { %1061 = vmatprep.subr.bf16.mxu0 %v1168_v41  ;;  %1069 = vmatprep.subr.bf16.mxu1 %v1170_v43 }
  0x74   : > { %1062 = vmatpush3.bf16.msra.mxu0 %v1168_v41 }
  0x75   : > { %1063 = vmatprep.subr.bf16.mxu0 %v1169_v42 }
  0x78   : > { %1064 = vmatpush3.bf16.msra.mxu0 %v1169_v42 }
 0x12e   : > { %v1027_v22 = vpop.f32.mrb[0].mxu0 }
 0x12f   : > { %v433_v23 = vadd.f32 %v1027_v22, %v954_v21  ;;  %v424_v24 = vpop.f32.mrb[1].mxu0 }
 0x130   : > { %v425_v25 = vadd.f32 %v954_v21, %v424_v24  ;;  %v1028_v26 = vpop.f32.mrb[2].mxu0 }
 0x131   : > { %v445_v27 = vmul.f32 0.2, %v433_v23  ;;  %v436_v28 = vadd.f32 %v1028_v26, %v954_v21  ;;  %v427_v29 = vpop.f32.mrb[3].mxu0  ;;  %vm441_vm2 = vcmp.gt.f32.partialorder %v433_v23, 0.0 }
 0x132   : > { %v443_v30 = vmul.f32 0.2, %v425_v25  ;;  %v428_v31 = vadd.f32 %v954_v21, %v427_v29  ;;  %vm439_vm4 = vcmp.gt.f32.partialorder %v425_v25, 0.0 }
 0x133   : > { %vm442_vm3 = vcmp.gt.f32.partialorder %v436_v28, 0.0  ;;  %v446_v32 = vmul.f32 0.2, %v436_v28  ;;  %v449_v34 = vsel %vm441_vm2, %v433_v23, %v445_v27 }
 0x134   : > { %v444_v33 = vmul.f32 0.2, %v428_v31  ;;  %vm440_vm5 = vcmp.gt.f32.partialorder %v428_v31, 0.0  ;;  %v447_v36 = vsel %vm439_vm4, %v425_v25, %v443_v30  ;;  %v975_v25 = vld [vmem:[%s1584_s8] ss:$0 sm:$0xff] }
 0x135   : > { %v450_v35 = vsel %vm442_vm3, %v436_v28, %v446_v32 }
 0x136   : > { %v448_v37 = vsel %vm440_vm5, %v428_v31, %v444_v33  ;;  %v452_v38 = vpack.c.bf16 %v450_v35, %v449_v34 }
 0x137   : > { %v451_v39 = vpack.c.bf16 %v448_v37, %v447_v36 }
 0x139   : > { %1045 = vmatprep.mubr.bf16.mxu1 %v451_v39 }
 0x13a   : > { %1046 = vmatmul.mubr.bf16.vlgmr.msra.gmra.mrb[0].mxu1 %v452_v38 }
 0x13b   : > { %1070 = vmatpush3.bf16.msra.mxu1 %v1170_v43 }
 0x13c   : > { %1071 = vmatprep.subr.bf16.mxu1 %v1171_v44 }
 0x13f   : > { %1072 = vmatpush3.bf16.msra.mxu1 %v1171_v44 }
 0x140   : > { %1073 = vmatprep.subr.bf16.mxu1 %v1172_v45 }
 0x143   : > { %1074 = vmatpush3.bf16.msra.mxu1 %v1172_v45 }
 0x144   : > { %1075 = vmatprep.subr.bf16.mxu1 %v1173_v46 }
 0x147   : > { %1076 = vmatpush3.bf16.msra.mxu1 %v1173_v46 }
 0x148   : > { %1077 = vmatprep.subr.bf16.mxu1 %v1174_v47 }
 0x14b   : > { %1078 = vmatpush3.bf16.msra.mxu1 %v1174_v47 }
 0x14c   : > { %1079 = vmatprep.subr.bf16.mxu1 %v1175_v3 }
 0x14f   : > { %1080 = vmatpush3.bf16.msra.mxu1 %v1175_v3 }
 0x150   : > { %1081 = vmatprep.subr.bf16.mxu1 %v1176_v4 }
 0x153   : > { %1082 = vmatpush3.bf16.msra.mxu1 %v1176_v4 }
 0x154   : > { %1083 = vmatprep.subr.bf16.mxu1 %v1177_v5 }
 0x157   : > { %1084 = vmatpush3.bf16.msra.mxu1 %v1177_v5 }
 0x20d   : > { %v1047_v49 = vpop.f32.mrb[0].mxu1 }
 0x20e   : > { %v567_v50 = vadd.f32 %v1047_v49, %v957_v48  ;;  %v558_v51 = vpop.f32.mrb[1].mxu1 }
 0x20f   : > { %v559_v52 = vadd.f32 %v957_v48, %v558_v51  ;;  %v1048_v53 = vpop.f32.mrb[2].mxu1 }
 0x210   : > { %v579_v54 = vmul.f32 0.2, %v567_v50  ;;  %v570_v55 = vadd.f32 %v1048_v53, %v957_v48  ;;  %v561_v56 = vpop.f32.mrb[3].mxu1  ;;  %vm575_vm6 = vcmp.gt.f32.partialorder %v567_v50, 0.0 }
 0x211   : > { %v577_v57 = vmul.f32 0.2, %v559_v52  ;;  %v562_v58 = vadd.f32 %v957_v48, %v561_v56  ;;  %vm573_vm7 = vcmp.gt.f32.partialorder %v559_v52, 0.0 }
 0x212   : > { %vm576_vm8 = vcmp.gt.f32.partialorder %v570_v55, 0.0  ;;  %v580_v59 = vmul.f32 0.2, %v570_v55  ;;  %v583_v61 = vsel %vm575_vm6, %v567_v50, %v579_v54 }
 0x213   : > { %vm574_vm9 = vcmp.gt.f32.partialorder %v562_v58, 0.0  ;;  %v578_v60 = vmul.f32 0.2, %v562_v58  ;;  %v581_v0 = vsel %vm573_vm7, %v559_v52, %v577_v57 }
 0x214   : > { %v584_v62 = vsel %vm576_vm8, %v570_v55, %v580_v59 }
 0x215   : > { %v586_v63 = vpack.c.bf16 %v584_v62, %v583_v61  ;;  %v582_v1 = vsel %vm574_vm9, %v562_v58, %v578_v60 }
 0x216   : > { %v585_v2 = vpack.c.bf16 %v582_v1, %v581_v0 }
 0x218   : > { %1065 = vmatprep.mubr.bf16.mxu0 %v585_v2 }
 0x219   : > { %1066 = vmatmul.mubr.bf16.vlgmr.msra.gmra.mrb[4].mxu0 %v586_v63 }
 0x2ec   : > { %v1067_v7 = vpop.f32.mrb[4].mxu0 }
 0x2ed   : > { %v701_v8 = vadd.f32 %v1067_v7, %v966_v6  ;;  %v692_v9 = vpop.f32.mrb[5].mxu0 }
 0x2ee   : > { %v693_v10 = vadd.f32 %v966_v6, %v692_v9  ;;  %v1068_v11 = vpop.f32.mrb[6].mxu0 }
 0x2ef   : > { %v713_v12 = vmul.f32 0.2, %v701_v8  ;;  %v704_v13 = vadd.f32 %v1068_v11, %v966_v6  ;;  %v695_v14 = vpop.f32.mrb[7].mxu0  ;;  %vm709_vm10 = vcmp.gt.f32.partialorder %v701_v8, 0.0 }
 0x2f0   : > { %v711_v15 = vmul.f32 0.2, %v693_v10  ;;  %v696_v16 = vadd.f32 %v966_v6, %v695_v14  ;;  %vm707_vm11 = vcmp.gt.f32.partialorder %v693_v10, 0.0 }
 0x2f1   : > { %vm710_vm12 = vcmp.gt.f32.partialorder %v704_v13, 0.0  ;;  %v714_v17 = vmul.f32 0.2, %v704_v13  ;;  %v717_v19 = vsel %vm709_vm10, %v701_v8, %v713_v12 }
 0x2f2   : > { %vm708_vm13 = vcmp.gt.f32.partialorder %v696_v16, 0.0  ;;  %v712_v18 = vmul.f32 0.2, %v696_v16  ;;  %v715_v22 = vsel %vm707_vm11, %v693_v10, %v711_v15 }
 0x2f3   : > { %v718_v20 = vsel %vm710_vm12, %v704_v13, %v714_v17 }
 0x2f4   : > { %v720_v21 = vpack.c.bf16 %v718_v20, %v717_v19  ;;  %v716_v23 = vsel %vm708_vm13, %v696_v16, %v712_v18 }
 0x2f5   : > { %v719_v24 = vpack.c.bf16 %v716_v23, %v715_v22 }
 0x2f7   : > { %1085 = vmatprep.mubr.bf16.mxu1 %v719_v24 }
 0x2f8   : > { %1086 = vmatmul.mubr.bf16.vlgmr.msra.gmra.mrb[4].mxu1 %v720_v21 }
 0x3cb   : > { %v1087_v26 = vpop.f32.mrb[4].mxu1 }
 0x3cc   : > { %v835_v27 = vadd.f32 %v1087_v26, %v975_v25  ;;  %v826_v28 = vpop.f32.mrb[5].mxu1 }
 0x3cd   : > { %v827_v29 = vadd.f32 %v975_v25, %v826_v28  ;;  %v1088_v30 = vpop.f32.mrb[6].mxu1 }
 0x3ce   : > { %843 = vst [vmem:[%s356_s26 + $0x10] sm:$0xff] %v835_v27  ;;  %v838_v31 = vadd.f32 %v1088_v30, %v975_v25  ;;  %v829_v32 = vpop.f32.mrb[7].mxu1 }
 0x3cf   : > { %841 = vst [vmem:[%s356_s26] sm:$0xff] %v827_v29  ;;  %v830_v33 = vadd.f32 %v975_v25, %v829_v32 }
 0x3d0   : > { %844 = vst [vmem:[%s356_s26 + $0x18] sm:$0xff] %v838_v31 }
 0x3d1   : > { %842 = vst [vmem:[%s356_s26 + $0x8] sm:$0xff] %v830_v33 }
 0x3d2   : > { %1247 = shalt.err (!%p1244_p11)
}
 0x3d3   : > { %s1248_s11 = scalar_lea.hbm %s1533_s16, 512  ;;  %s1252_s24 = scalar_lea.hbm %s1585_s9, 1024 }
 0x3d4   : > { %p1249_p13 = scmp.ne.s32.totalorder %s1533_s16, %s1248_s11  ;;  %p1253_p6 = scmp.lt.u32.totalorder %s1533_s16, %s1585_s9 }
 0x3d5   : > { %p1254_p9 = scmp.lt.u32.totalorder %s1252_s24, %s1248_s11  ;;  %p1256_p12 = scmp.lt.u32.totalorder %s1248_s11, %s1533_s16 }
 0x3d6   : > { %p1250_p5 = pnand %p1249_p13, %p1604_p1 }
 0x3d7   : > { %p1255_p10 = por %p1254_p9, %p1253_p6 }
 0x3d8   : > { %p1251_p0 = pneg %p1250_p5 }
 0x3d9   : > { %p1257_p2 = por %p1256_p12, %p1255_p10 }
 0x3db   : > { %p1258_p3 = pnand %p1257_p2, %p1251_p0 }
 0x3dd   : > { %1261 = shalt.err (!%p1258_p3)
}
 0x3de   : > { %s1311_s28 = smov 128   ;;  %s1312_s29 = smov 8  }
 0x3df   : > { %1098 = dma.vmem_to_hbm [thread:$0]  (%p1604_p1), %s1528_s27, 512, %s1533_s16, %s1535_s13, %s1311_s28, %s1311_s28, %s1312_s29  }
 0x3e0 PF: > { %p1115_p4 = scmp.ge.s32.totalorder %s1304_s12, 2  ;;  %s874_s14 = sand.u32 1, %s1292_s30  }
 0x3e1   : > { %p1605_p7 = scmp.ne.s32.totalorder %s1596_s20, 0  ;;  %s875_s17 = scalar_lea.sflag [#allocation4], %s874_s14 }
 0x3e3   : > { %p1108_p8 = pnand %p1115_p4, %p1605_p7 }
 0x3e5   : > { %1287 = dma.done.wait (!%p1108_p8), %s875_s17, 512  }
 0x3e6   : > { %1289 = vsyncadd (!%p1108_p8), %s875_s17, 4294966784  ;;  %s1606_s12 = sld [smem:[#allocation12_spill]]  ;;  %s1607_s22 = sld [smem:[#allocation11_spill]] }
 0x3e7   : > { %s1608_s11 = sld [smem:[#allocation13_spill]]  ;;  %s1609_s30 = smov %s1296_s10 }
 0x3ec   : > { %p21_p11 = scmp.ge.s32.totalorder %s1606_s12, 4   ;;  %s1610_s10 = smov %s1607_s22 }
 0x3ee   :  { %23 = sbr.rel (!%p21_p11) target bundleno = 5 (0x5), region = 100 }
 0x3f5   :  { %880 = vsyncpa [#allocation3], 1 }
 0x3f6   :  { %882 = vsyncpa [#allocation3 + $0x1], 1 }
 0x3f7   :  { %883 = vsyncpa [#allocation6], 1 }
 0x3f8   :  { %884 = vsyncpa [#allocation4], 1 }
 0x3f9   :  { %886 = vsyncpa [#allocation4 + $0x1], 1 }

// kernel: tpu_custom_call.1
= control target key start
LH: loop header
LB: loop body
LE: loop exit
PB: predicated region body
PF: predicated region fallthrough
CT: control target
= control target key end

     0   :  { %14 = vsyncpa [#allocation3], 0  ;;  %s1576_s0 = inlined_call_operand.vmem [shape: f32[64,8], index: 0, kind: input, shape index: {}]   ;;  %s1577_s1 = inlined_call_operand.vmem [shape: bf16[8,128], index: 1, kind: input, shape index: {}]   ;;  %s1578_s2 = inlined_call_operand.vmem [shape: f32[1,128], index: 2, kind: input, shape index: {}]   ;;  %s1579_s3 = inlined_call_operand.vmem [shape: bf16[128,128], index: 3, kind: input, shape index: {}]   ;;  %s1580_s4 = inlined_call_operand.vmem [shape: f32[1,128], index: 4, kind: input, shape index: {}]   ;;  %s1581_s5 = inlined_call_operand.hbm [shape: bf16[128,128], index: 5, kind: input, shape index: {}]   ;;  %s1582_s6 = inlined_call_operand.vmem [shape: f32[1,128], index: 6, kind: input, shape index: {}]   ;;  %s1583_s7 = inlined_call_operand.hbm [shape: bf16[128,128], index: 7, kind: input, shape index: {}]   ;;  %s1584_s8 = inlined_call_operand.vmem [shape: f32[1,128], index: 8, kind: input, shape index: {}]   ;;  %s1585_s9 = inlined_call_operand.hbm [shape: f32[64,128], index: 9, kind: output, shape index: {}]  }
   0x1   :  { %15 = vsyncpa [#allocation6], 0 }
   0x2   :  { %16 = vsyncpa [#allocation4], 0 }
   0x3   :  { %18 = vsyncpa [#allocation4 + $0x1], 0  ;;  %s1363_s30 = smov 0   ;;  %s1365_s10 = smov 0  }
   0x4   :  { %s1367_s11 = smov 0   ;;  %s1369_s12 = smov 0  }
   0x5 LB: > { %1592 = sst [smem:[#allocation11_spill]] %s1300_s11  ;;  %s1384_s13 = sadd.s32 4294967295, %s1304_s12   ;;  %s1304_s12 = sphi %s1369_s12, %s1606_s12   ;;  %s1300_s11 = sphi %s1367_s11, %s1608_s11   ;;  %s1296_s10 = sphi %s1365_s10, %s1610_s10   ;;  %s1292_s30 = sphi %s1363_s30, %s1609_s30  }
   0x6   : > { %s943_s14 = sadd.s32 4294967294, %s1304_s12   ;;  %s1388_s15 = sadd.s32 1, %s1304_s12  }
   0x7   : > { %1593 = sst [smem:[#allocation12_spill]] %s1388_s15  ;;  %s225_s16 = sadd.s32 1, %s1300_s11 }
   0x8   : > { %s222_s17 = ssub.s32 %s1304_s12, %s1388_s15  ;;  %p235_p0 = scmp.ne.s32.totalorder %s1300_s11, %s1296_s10 }
   0x9   : > { %p223_p1 = scmp.eq.s32.totalorder %s222_s17, 0  ;;  %p236_p2 = scmp.eq.s32.totalorder %s1384_s13, 1 }
   0xa   : > { %p241_p3 = scmp.ne.s32.totalorder %s1296_s10, %s1292_s30  ;;  %p242_p4 = scmp.eq.s32.totalorder %s943_s14, 1 }
   0xb   : > { %s1399_s18 = scalar_select %p223_p1, %s1300_s11, %s225_s16  }
   0xc   : > { %p1401_p5 = por %p236_p2, %p235_p0  ;;  %p1405_p6 = por %p242_p4, %p241_p3 }
   0xd   : > { %1594 = sst [smem:[#allocation13_spill]] %s1399_s18  ;;  %p944_p7 = scmp.ge.s32.totalorder %s1304_s12, 1 }
   0xe   : > { %s1595_s19 = scalar_select %p1401_p5, 1, 0 }
   0xf   : > { %s1596_s20 = scalar_select %p1405_p6, 1, 0 }
  0x10   : > { %p249_p8 = scmp.lt.s32.totalorder %s1304_s12, 3  ;;  %p1586_p9 = scmp.eq.s32.totalorder %s1384_s13, 0 }
  0x11   : > { %s1306_s22 = smov [#allocation2]   ;;  %s1307_s25 = smov [#allocation5]  }
  0x12   : > { %p1412_p10 = pnand %p944_p7, %p249_p8  ;;  %s273_s23 = sshll.u32 %s1306_s22, 4  ;;  %s274_s23 = int_to_ptr.vmem [resolvable:$true] %s273_s23 }
  0x13   : > { %s289_s26 = sshll.u32 %s1307_s25, 4  ;;  %s1178_s29 = scalar_lea.hbm %s1581_s5, 1024  ;;  %s1424_s26 = int_to_ptr.vmem [resolvable:$true] %s289_s26 }
  0x14   : > { %s1597_s21 = scalar_select %p1412_p10, 1, 0 }
  0x15   : > { %p1100_p11 = pneg %p1412_p10  ;;  %p1179_p13 = scmp.ne.s32.totalorder %s1581_s5, %s1178_s29 }
  0x16   : > { %p1185_p3 = scmp.lt.u32.totalorder %s1178_s29, %s1581_s5 }
  0x17   : > { %p1420_p12 = pnand %p1586_p9, %p1100_p11 }
  0x19   : > { %p1180_p0 = pneg %p1420_p12 }
  0x1b   : > { %p1181_p1 = pnand %p1180_p0, %p1179_p13 }
  0x1d   : > { %p1182_p2 = pneg %p1181_p1 }
  0x1f   : > { %p1187_p4 = pnand %p1185_p3, %p1182_p2 }
  0x21   : > { %1190 = shalt.err (!%p1187_p4)
}
  0x22   : > { %s1191_s25 = scalar_lea.vmem %s274_s23, 1024  ;;  %p1199_p9 = scmp.lt.s32.totalorder %s274_s23, %s274_s23 }
  0x23   : > { %p1192_p7 = scmp.ne.s32.totalorder %s274_s23, %s1191_s25  ;;  %p1200_p6 = scmp.lt.s32.totalorder %s1191_s25, %s1191_s25 }
  0x25   : > { %p1194_p8 = pnand %p1192_p7, %p1180_p0  ;;  %p1201_p5 = por %p1200_p6, %p1199_p9 }
  0x27   : > { %p1195_p11 = pneg %p1194_p8 }
  0x29   : > { %p1202_p10 = pnand %p1201_p5, %p1195_p11 }
  0x2b   : > { %1205 = shalt.err (!%p1202_p10)
}
  0x2c   : > { %s1308_s27 = smov 64   ;;  %s1309_s28 = smov 4  }
  0x2d   : > { %1103 = dma.hbm_to_vmem [thread:$0]  (!%p1420_p12), %s1581_s5, 1024, %s274_s23, [#allocation3], %s1308_s27, %s1308_s27, %s1309_s28  }
  0x2e   : > { %s1206_s22 = scalar_lea.hbm %s1583_s7, 1024 }
  0x2f   : > { %p1207_p13 = scmp.ne.s32.totalorder %s1583_s7, %s1206_s22  ;;  %p1213_p9 = scmp.lt.u32.totalorder %s1206_s22, %s1583_s7 }
  0x31   : > { %p1209_p5 = pnand %p1207_p13, %p1180_p0 }
  0x33   : > { %p1210_p6 = pneg %p1209_p5 }
  0x35   : > { %p1215_p10 = pnand %p1213_p9, %p1210_p6 }
  0x37   : > { %1218 = shalt.err (!%p1215_p10)
}
  0x38   : > { %s1219_s23 = scalar_lea.vmem %s1424_s26, 1024  ;;  %p1227_p4 = scmp.lt.s32.totalorder %s1424_s26, %s1424_s26 }
  0x39   : > { %p1220_p1 = scmp.ne.s32.totalorder %s1424_s26, %s1219_s23  ;;  %p1228_p7 = scmp.lt.s32.totalorder %s1219_s23, %s1219_s23 }
  0x3b   : > { %p1222_p2 = pnand %p1220_p1, %p1180_p0  ;;  %p1229_p8 = por %p1228_p7, %p1227_p4 }
  0x3d   : > { %p1223_p3 = pneg %p1222_p2 }
  0x3f   : > { %p1230_p11 = pnand %p1229_p8, %p1223_p3 }
  0x41   : > { %1233 = shalt.err (!%p1230_p11)
}
  0x42   : > { %1106 = dma.hbm_to_vmem [thread:$0]  (!%p1420_p12), %s1583_s7, 1024, %s1424_s26, [#allocation6], %s1308_s27, %s1308_s27, %s1309_s28  }
  0x43   : > { %p1599_p13 = scmp.ne.s32.totalorder %s1597_s21, 0 }
  0x44   : > { %p1600_p5 = scmp.eq.s32.totalorder (!%p1599_p13), %s1384_s13, 0 }
  0x45   : > { %317 = sbr.rel (%p1599_p13) target bundleno = 992 (0x3e0), region = 56 }
  0x4c   : > { %1279 = dma.done.wait (%p1600_p5), [#allocation3], 1024   ;;  %p1601_p0 = pmov %p1600_p5 }
  0x4e   : > { %1281 = vsyncadd (%p1601_p0), [#allocation3], 4294966272  ;;  %p1602_p6 = pmov %p1601_p0 }
  0x4f   : > { %p1603_p9 = pmov %p1601_p0 }
  0x50   : > { %1283 = dma.done.wait (%p1602_p6), [#allocation6], 1024  }
  0x51   : > { %1285 = vsyncadd (%p1603_p9), [#allocation6], 4294966272  ;;  %s952_s18 = sshll.u32 %s1384_s13, 2  ;;  %vm386_vm0 = vcmask 1043456   ;;  %v371_v0 = vld [vmem:[%s1577_s1] sm:$0xf] }
  0x52   : > { %p358_p10 = scmp.lt.s32.totalorder %s952_s18, 7  ;;  %vm379_vm1 = vcmask 64512   ;;  %1089 = vmatprep.subr.msk.bf16.mxu0 %vm386_vm0, %v371_v0  ;;  %v388_v3 = vsel %vm386_vm0, %v371_v0, 0  ;;  %v1154_v8 = vld [vmem:[%s1579_s3] sm:$0xff]   ;;  %v1155_v9 = vld [vmem:[%s1579_s3 + $0x8] sm:$0xff]   ;;  %v1156_v10 = vld [vmem:[%s1579_s3 + $0x10] sm:$0xff]  }
  0x53   : > { %1024 = vmatpush3.bf16.msra.mxu0 %v388_v3  ;;  %1029 = vmatprep.subr.bf16.mxu1 %v1154_v8  ;;  %v1157_v11 = vld [vmem:[%s1579_s3 + $0x18] sm:$0xff]   ;;  %v1158_v12 = vld [vmem:[%s1579_s3 + $0x20] sm:$0xff]   ;;  %v1159_v13 = vld [vmem:[%s1579_s3 + $0x28] sm:$0xff]   ;;  %s354_s15 = sand.u32 1, %s1296_s10   ;;  %s989_s28 = sshll.u32 %s1384_s13, 9 }
  0x54   : > { %s1612_s18 = smov (!%p358_p10, %s952_s18), 7  ;;  %1030 = vmatpush3.bf16.msra.mxu1 %v1154_v8  ;;  %v1160_v14 = vld [vmem:[%s1579_s3 + $0x30] sm:$0xff]   ;;  %v1161_v15 = vld [vmem:[%s1579_s3 + $0x38] sm:$0xff]   ;;  %v1162_v16 = vld [vmem:[#allocation2] sm:$0xff]   ;;  %s1533_s16 = scalar_lea.hbm %s1585_s9, %s989_s28 }
  0x55   : > { %s953_s24 = sshll.u32 %s1612_s18, 3  ;;  %1031 = vmatprep.subr.bf16.mxu1 %v1155_v9  ;;  %v1163_v17 = vld [vmem:[#allocation2 + $0x8] sm:$0xff]   ;;  %1049 = vmatprep.subr.bf16.mxu0 %v1162_v16  ;;  %v1164_v18 = vld [vmem:[#allocation2 + $0x10] sm:$0xff]   ;;  %v1165_v19 = vld [vmem:[#allocation2 + $0x18] sm:$0xff]   ;;  %s951_s18 = sshll.u32 %s354_s15, 5 }
  0x56   : > { %s361_s27 = scalar_lea.vmem %s1576_s0, %s953_s24  ;;  %v1166_v20 = vld [vmem:[#allocation2 + $0x20] sm:$0xff]   ;;  %v1167_v40 = vld [vmem:[#allocation2 + $0x28] sm:$0xff]   ;;  %v1168_v41 = vld [vmem:[#allocation2 + $0x30] sm:$0xff]   ;;  %s356_s26 = scalar_lea.vmem [#allocation7], %s951_s18 }
  0x57   : > { %v365_v1 = vld [vmem:[%s361_s27] sm:$0xff]  ;;  %v366_v2 = vld [vmem:[%s361_s27 + $0x8] sm:$0xff]  ;;  %v367_v5 = vld [vmem:[%s361_s27 + $0x10] sm:$0xff]  ;;  %s1535_s13 = scalar_lea.sflag [#allocation4], %s354_s15  ;;  %p1604_p1 = scmp.ne.s32.totalorder %s1595_s19, 0 }
  0x58   : > { %v369_v4 = vpack.c.bf16 %v366_v2, %v365_v1  ;;  %v368_v6 = vld [vmem:[%s361_s27 + $0x18] sm:$0xff]  ;;  %1032 = vmatpush3.bf16.msra.mxu1 %v1155_v9  ;;  %v954_v21 = vld [vmem:[%s1578_s2] ss:$0 sm:$0xff]  ;;  %v1171_v44 = vld [vmem:[#allocation5 + $0x8] sm:$0xff]   ;;  %s859_s27 = sshll.u32 %s356_s26, 4  ;;  %s1310_s22 = smov [#allocation7]   ;;  %s1528_s27 = int_to_ptr.vmem [resolvable:$true] %s859_s27 }
  0x59   : > { %v370_v7 = vpack.c.bf16 %v368_v6, %v367_v5  ;;  %1033 = vmatprep.subr.bf16.mxu1 %v1156_v10  ;;  %v1169_v42 = vld [vmem:[#allocation2 + $0x38] sm:$0xff]   ;;  %v1170_v43 = vld [vmem:[#allocation5] sm:$0xff]   ;;  %v1172_v45 = vld [vmem:[#allocation5 + $0x10] sm:$0xff]   ;;  %s1234_s17 = scalar_lea.vmem %s1528_s27, 512  ;;  %s1238_s25 = sshll.u32 %s1310_s22, 4  ;;  %s1239_s25 = int_to_ptr.vmem [resolvable:$false] %s1238_s25 }
  0x5a   : > { %1025 = vmatprep.mubr.msk.bf16.mxu0 %vm379_vm1, %v369_v4  ;;  %v1173_v46 = vld [vmem:[#allocation5 + $0x18] sm:$0xff]   ;;  %v1174_v47 = vld [vmem:[#allocation5 + $0x20] sm:$0xff]   ;;  %v1175_v3 = vld [vmem:[#allocation5 + $0x28] sm:$0xff]   ;;  %p1235_p12 = scmp.ne.s32.totalorder %s1528_s27, %s1234_s17  ;;  %s1240_s23 = scalar_lea.vmem %s1239_s25, 1024 }
  0x5b   : > { %1026 = vmatmul.mubr.msk.bf16.vlgmr.msra.gmra.mrb[0].mxu0 %vm379_vm1, %v370_v7  ;;  %v957_v48 = vld [vmem:[%s1580_s4] ss:$0 sm:$0xff]  ;;  %v1176_v4 = vld [vmem:[#allocation5 + $0x30] sm:$0xff]   ;;  %v1177_v5 = vld [vmem:[#allocation5 + $0x38] sm:$0xff]   ;;  %p1241_p4 = scmp.lt.s32.totalorder %s1528_s27, %s1239_s25  ;;  %p1242_p7 = scmp.lt.s32.totalorder %s1240_s23, %s1234_s17 }
  0x5c   : > { %1034 = vmatpush3.bf16.msra.mxu1 %v1156_v10  ;;  %1050 = vmatpush3.bf16.msra.mxu0 %v1162_v16  ;;  %v966_v6 = vld [vmem:[%s1582_s6] ss:$0 sm:$0xff]  ;;  %p1236_p2 = pnand %p1235_p12, %p1604_p1 }
  0x5d   : > { %1035 = vmatprep.subr.bf16.mxu1 %v1157_v11  ;;  %1051 = vmatprep.subr.bf16.mxu0 %v1163_v17  ;;  %p1243_p8 = por %p1242_p7, %p1241_p4 }
  0x5e   : > { %p1237_p3 = pneg %p1236_p2 }
  0x60   : > { %1036 = vmatpush3.bf16.msra.mxu1 %v1157_v11  ;;  %1052 = vmatpush3.bf16.msra.mxu0 %v1163_v17  ;;  %p1244_p11 = pnand %p1243_p8, %p1237_p3 }
  0x61   : > { %1037 = vmatprep.subr.bf16.mxu1 %v1158_v12  ;;  %1053 = vmatprep.subr.bf16.mxu0 %v1164_v18 }
  0x64   : > { %1038 = vmatpush3.bf16.msra.mxu1 %v1158_v12  ;;  %1054 = vmatpush3.bf16.msra.mxu0 %v1164_v18 }
  0x65   : > { %1039 = vmatprep.subr.bf16.mxu1 %v1159_v13  ;;  %1055 = vmatprep.subr.bf16.mxu0 %v1165_v19 }
  0x68   : > { %1040 = vmatpush3.bf16.msra.mxu1 %v1159_v13  ;;  %1056 = vmatpush3.bf16.msra.mxu0 %v1165_v19 }
  0x69   : > { %1041 = vmatprep.subr.bf16.mxu1 %v1160_v14  ;;  %1057 = vmatprep.subr.bf16.mxu0 %v1166_v20 }
  0x6c   : > { %1042 = vmatpush3.bf16.msra.mxu1 %v1160_v14  ;;  %1058 = vmatpush3.bf16.msra.mxu0 %v1166_v20 }
  0x6d   : > { %1043 = vmatprep.subr.bf16.mxu1 %v1161_v15  ;;  %1059 = vmatprep.subr.bf16.mxu0 %v1167_v40 }
  0x70   : > { %1044 = vmatpush3.bf16.msra.mxu1 %v1161_v15  ;;  %1060 = vmatpush3.bf16.msra.mxu0 %v1167_v40 }
  0x71   : > { %1061 = vmatprep.subr.bf16.mxu0 %v1168_v41  ;;  %1069 = vmatprep.subr.bf16.mxu1 %v1170_v43 }
  0x74   : > { %1062 = vmatpush3.bf16.msra.mxu0 %v1168_v41 }
  0x75   : > { %1063 = vmatprep.subr.bf16.mxu0 %v1169_v42 }
  0x78   : > { %1064 = vmatpush3.bf16.msra.mxu0 %v1169_v42 }
 0x12e   : > { %v1027_v22 = vpop.f32.mrb[0].mxu0 }
 0x12f   : > { %v433_v23 = vadd.f32 %v1027_v22, %v954_v21  ;;  %v424_v24 = vpop.f32.mrb[1].mxu0 }
 0x130   : > { %v425_v25 = vadd.f32 %v954_v21, %v424_v24  ;;  %v1028_v26 = vpop.f32.mrb[2].mxu0 }
 0x131   : > { %v445_v27 = vmul.f32 0.2, %v433_v23  ;;  %v436_v28 = vadd.f32 %v1028_v26, %v954_v21  ;;  %v427_v29 = vpop.f32.mrb[3].mxu0  ;;  %vm441_vm2 = vcmp.gt.f32.partialorder %v433_v23, 0.0 }
 0x132   : > { %v443_v30 = vmul.f32 0.2, %v425_v25  ;;  %v428_v31 = vadd.f32 %v954_v21, %v427_v29  ;;  %vm439_vm4 = vcmp.gt.f32.partialorder %v425_v25, 0.0 }
 0x133   : > { %vm442_vm3 = vcmp.gt.f32.partialorder %v436_v28, 0.0  ;;  %v446_v32 = vmul.f32 0.2, %v436_v28  ;;  %v449_v34 = vsel %vm441_vm2, %v433_v23, %v445_v27 }
 0x134   : > { %v444_v33 = vmul.f32 0.2, %v428_v31  ;;  %vm440_vm5 = vcmp.gt.f32.partialorder %v428_v31, 0.0  ;;  %v447_v36 = vsel %vm439_vm4, %v425_v25, %v443_v30  ;;  %v975_v25 = vld [vmem:[%s1584_s8] ss:$0 sm:$0xff] }
 0x135   : > { %v450_v35 = vsel %vm442_vm3, %v436_v28, %v446_v32 }
 0x136   : > { %v448_v37 = vsel %vm440_vm5, %v428_v31, %v444_v33  ;;  %v452_v38 = vpack.c.bf16 %v450_v35, %v449_v34 }
 0x137   : > { %v451_v39 = vpack.c.bf16 %v448_v37, %v447_v36 }
 0x139   : > { %1045 = vmatprep.mubr.bf16.mxu1 %v451_v39 }
 0x13a   : > { %1046 = vmatmul.mubr.bf16.vlgmr.msra.gmra.mrb[0].mxu1 %v452_v38 }
 0x13b   : > { %1070 = vmatpush3.bf16.msra.mxu1 %v1170_v43 }
 0x13c   : > { %1071 = vmatprep.subr.bf16.mxu1 %v1171_v44 }
 0x13f   : > { %1072 = vmatpush3.bf16.msra.mxu1 %v1171_v44 }
 0x140   : > { %1073 = vmatprep.subr.bf16.mxu1 %v1172_v45 }
 0x143   : > { %1074 = vmatpush3.bf16.msra.mxu1 %v1172_v45 }
 0x144   : > { %1075 = vmatprep.subr.bf16.mxu1 %v1173_v46 }
 0x147   : > { %1076 = vmatpush3.bf16.msra.mxu1 %v1173_v46 }
 0x148   : > { %1077 = vmatprep.subr.bf16.mxu1 %v1174_v47 }
 0x14b   : > { %1078 = vmatpush3.bf16.msra.mxu1 %v1174_v47 }
 0x14c   : > { %1079 = vmatprep.subr.bf16.mxu1 %v1175_v3 }
 0x14f   : > { %1080 = vmatpush3.bf16.msra.mxu1 %v1175_v3 }
 0x150   : > { %1081 = vmatprep.subr.bf16.mxu1 %v1176_v4 }
 0x153   : > { %1082 = vmatpush3.bf16.msra.mxu1 %v1176_v4 }
 0x154   : > { %1083 = vmatprep.subr.bf16.mxu1 %v1177_v5 }
 0x157   : > { %1084 = vmatpush3.bf16.msra.mxu1 %v1177_v5 }
 0x20d   : > { %v1047_v49 = vpop.f32.mrb[0].mxu1 }
 0x20e   : > { %v567_v50 = vadd.f32 %v1047_v49, %v957_v48  ;;  %v558_v51 = vpop.f32.mrb[1].mxu1 }
 0x20f   : > { %v559_v52 = vadd.f32 %v957_v48, %v558_v51  ;;  %v1048_v53 = vpop.f32.mrb[2].mxu1 }
 0x210   : > { %v579_v54 = vmul.f32 0.2, %v567_v50  ;;  %v570_v55 = vadd.f32 %v1048_v53, %v957_v48  ;;  %v561_v56 = vpop.f32.mrb[3].mxu1  ;;  %vm575_vm6 = vcmp.gt.f32.partialorder %v567_v50, 0.0 }
 0x211   : > { %v577_v57 = vmul.f32 0.2, %v559_v52  ;;  %v562_v58 = vadd.f32 %v957_v48, %v561_v56  ;;  %vm573_vm7 = vcmp.gt.f32.partialorder %v559_v52, 0.0 }
 0x212   : > { %vm576_vm8 = vcmp.gt.f32.partialorder %v570_v55, 0.0  ;;  %v580_v59 = vmul.f32 0.2, %v570_v55  ;;  %v583_v61 = vsel %vm575_vm6, %v567_v50, %v579_v54 }
 0x213   : > { %vm574_vm9 = vcmp.gt.f32.partialorder %v562_v58, 0.0  ;;  %v578_v60 = vmul.f32 0.2, %v562_v58  ;;  %v581_v0 = vsel %vm573_vm7, %v559_v52, %v577_v57 }
 0x214   : > { %v584_v62 = vsel %vm576_vm8, %v570_v55, %v580_v59 }
 0x215   : > { %v586_v63 = vpack.c.bf16 %v584_v62, %v583_v61  ;;  %v582_v1 = vsel %vm574_vm9, %v562_v58, %v578_v60 }
 0x216   : > { %v585_v2 = vpack.c.bf16 %v582_v1, %v581_v0 }
 0x218   : > { %1065 = vmatprep.mubr.bf16.mxu0 %v585_v2 }
 0x219   : > { %1066 = vmatmul.mubr.bf16.vlgmr.msra.gmra.mrb[4].mxu0 %v586_v63 }
 0x2ec   : > { %v1067_v7 = vpop.f32.mrb[4].mxu0 }
 0x2ed   : > { %v701_v8 = vadd.f32 %v1067_v7, %v966_v6  ;;  %v692_v9 = vpop.f32.mrb[5].mxu0 }
 0x2ee   : > { %v693_v10 = vadd.f32 %v966_v6, %v692_v9  ;;  %v1068_v11 = vpop.f32.mrb[6].mxu0 }
 0x2ef   : > { %v713_v12 = vmul.f32 0.2, %v701_v8  ;;  %v704_v13 = vadd.f32 %v1068_v11, %v966_v6  ;;  %v695_v14 = vpop.f32.mrb[7].mxu0  ;;  %vm709_vm10 = vcmp.gt.f32.partialorder %v701_v8, 0.0 }
 0x2f0   : > { %v711_v15 = vmul.f32 0.2, %v693_v10  ;;  %v696_v16 = vadd.f32 %v966_v6, %v695_v14  ;;  %vm707_vm11 = vcmp.gt.f32.partialorder %v693_v10, 0.0 }
 0x2f1   : > { %vm710_vm12 = vcmp.gt.f32.partialorder %v704_v13, 0.0  ;;  %v714_v17 = vmul.f32 0.2, %v704_v13  ;;  %v717_v19 = vsel %vm709_vm10, %v701_v8, %v713_v12 }
 0x2f2   : > { %vm708_vm13 = vcmp.gt.f32.partialorder %v696_v16, 0.0  ;;  %v712_v18 = vmul.f32 0.2, %v696_v16  ;;  %v715_v22 = vsel %vm707_vm11, %v693_v10, %v711_v15 }
 0x2f3   : > { %v718_v20 = vsel %vm710_vm12, %v704_v13, %v714_v17 }
 0x2f4   : > { %v720_v21 = vpack.c.bf16 %v718_v20, %v717_v19  ;;  %v716_v23 = vsel %vm708_vm13, %v696_v16, %v712_v18 }
 0x2f5   : > { %v719_v24 = vpack.c.bf16 %v716_v23, %v715_v22 }
 0x2f7   : > { %1085 = vmatprep.mubr.bf16.mxu1 %v719_v24 }
 0x2f8   : > { %1086 = vmatmul.mubr.bf16.vlgmr.msra.gmra.mrb[4].mxu1 %v720_v21 }
 0x3cb   : > { %v1087_v26 = vpop.f32.mrb[4].mxu1 }
 0x3cc   : > { %v835_v27 = vadd.f32 %v1087_v26, %v975_v25  ;;  %v826_v28 = vpop.f32.mrb[5].mxu1 }
 0x3cd   : > { %v827_v29 = vadd.f32 %v975_v25, %v826_v28  ;;  %v1088_v30 = vpop.f32.mrb[6].mxu1 }
 0x3ce   : > { %843 = vst [vmem:[%s356_s26 + $0x10] sm:$0xff] %v835_v27  ;;  %v838_v31 = vadd.f32 %v1088_v30, %v975_v25  ;;  %v829_v32 = vpop.f32.mrb[7].mxu1 }
 0x3cf   : > { %841 = vst [vmem:[%s356_s26] sm:$0xff] %v827_v29  ;;  %v830_v33 = vadd.f32 %v975_v25, %v829_v32 }
 0x3d0   : > { %844 = vst [vmem:[%s356_s26 + $0x18] sm:$0xff] %v838_v31 }
 0x3d1   : > { %842 = vst [vmem:[%s356_s26 + $0x8] sm:$0xff] %v830_v33 }
 0x3d2   : > { %1247 = shalt.err (!%p1244_p11)
}
 0x3d3   : > { %s1248_s11 = scalar_lea.hbm %s1533_s16, 512  ;;  %s1252_s24 = scalar_lea.hbm %s1585_s9, 1024 }
 0x3d4   : > { %p1249_p13 = scmp.ne.s32.totalorder %s1533_s16, %s1248_s11  ;;  %p1253_p6 = scmp.lt.u32.totalorder %s1533_s16, %s1585_s9 }
 0x3d5   : > { %p1254_p9 = scmp.lt.u32.totalorder %s1252_s24, %s1248_s11  ;;  %p1256_p12 = scmp.lt.u32.totalorder %s1248_s11, %s1533_s16 }
 0x3d6   : > { %p1250_p5 = pnand %p1249_p13, %p1604_p1 }
 0x3d7   : > { %p1255_p10 = por %p1254_p9, %p1253_p6 }
 0x3d8   : > { %p1251_p0 = pneg %p1250_p5 }
 0x3d9   : > { %p1257_p2 = por %p1256_p12, %p1255_p10 }
 0x3db   : > { %p1258_p3 = pnand %p1257_p2, %p1251_p0 }
 0x3dd   : > { %1261 = shalt.err (!%p1258_p3)
}
 0x3de   : > { %s1311_s28 = smov 128   ;;  %s1312_s29 = smov 8  }
 0x3df   : > { %1098 = dma.vmem_to_hbm [thread:$0]  (%p1604_p1), %s1528_s27, 512, %s1533_s16, %s1535_s13, %s1311_s28, %s1311_s28, %s1312_s29  }
 0x3e0 PF: > { %p1115_p4 = scmp.ge.s32.totalorder %s1304_s12, 2  ;;  %s874_s14 = sand.u32 1, %s1292_s30  }
 0x3e1   : > { %p1605_p7 = scmp.ne.s32.totalorder %s1596_s20, 0  ;;  %s875_s17 = scalar_lea.sflag [#allocation4], %s874_s14 }
 0x3e3   : > { %p1108_p8 = pnand %p1115_p4, %p1605_p7 }
 0x3e5   : > { %1287 = dma.done.wait (!%p1108_p8), %s875_s17, 512  }
 0x3e6   : > { %1289 = vsyncadd (!%p1108_p8), %s875_s17, 4294966784  ;;  %s1606_s12 = sld [smem:[#allocation12_spill]]  ;;  %s1607_s22 = sld [smem:[#allocation11_spill]] }
 0x3e7   : > { %s1608_s11 = sld [smem:[#allocation13_spill]]  ;;  %s1609_s30 = smov %s1296_s10 }
 0x3ec   : > { %p21_p11 = scmp.ge.s32.totalorder %s1606_s12, 4   ;;  %s1610_s10 = smov %s1607_s22 }
 0x3ee   :  { %23 = sbr.rel (!%p21_p11) target bundleno = 5 (0x5), region = 100 }
 0x3f5   :  { %880 = vsyncpa [#allocation3], 1 }
 0x3f6   :  { %882 = vsyncpa [#allocation3 + $0x1], 1 }
 0x3f7   :  { %883 = vsyncpa [#allocation6], 1 }
 0x3f8   :  { %884 = vsyncpa [#allocation4], 1 }
 0x3f9   :  { %886 = vsyncpa [#allocation4 + $0x1], 1 }

</bundles_post_ra>
